<compile_context>
chip_gen: v7x
topology: tpu7x:2x2x1
jax: 0.10.0
libtpu: 0.0.40
codegen_flags: <defaults>
</compile_context>

<pallas_src>
import functools

import jax
import jax.numpy as jnp
from jax.experimental import pallas as pl
from jax.experimental.pallas import tpu as pltpu

BN_EPS = 1e-5
NEG_SLOPE = 0.01
LANE = 128
SUBLANE = 8


def _round_up(n, m):
    return (n + m - 1) // m * m


def _bn_leaky_train(h, gamma, beta, inv_n):
    """Training-mode BatchNorm (folded per-feature affine) + LeakyReLU."""
    s = jnp.sum(h, axis=0, keepdims=True)
    sq = jnp.sum(h * h, axis=0, keepdims=True)
    mu = s * inv_n
    var = jnp.maximum(sq * inv_n - mu * mu, 0.0)      # guard fp cancellation
    scale = gamma * jax.lax.rsqrt(var + BN_EPS)       # [1, H]   (EUP rsqrt)
    shift = beta - mu * scale                         # [1, H]
    h = h * scale + shift                             # 2 full-tile VPU ops
    return jnp.maximum(h, NEG_SLOPE * h)              # LeakyReLU (slope < 1)


def _dueling_dqn_kernel(
    x_ref, mask_ref,
    w1_ref, g1_ref, be1_ref,
    w2_ref, g2_ref, be2_ref,
    wh_ref, bh_ref,
    out_ref,
    *, batch_true,
):
    inv_n = jnp.float32(1.0 / batch_true)

    # Layer 1: Linear (bias cancelled by train-mode BN) -> BN -> LeakyReLU.
    h = jnp.dot(x_ref[...], w1_ref[...], preferred_element_type=jnp.float32)
    h = _bn_leaky_train(h, g1_ref[...], be1_ref[...], inv_n)

    # Zero the padded batch rows so layer-2 BN statistics stay exact
    # (single vmul by the precomputed [B_pad, 1] 0/1 row mask).
    if h.shape[0] > batch_true:
        h = h * mask_ref[...]

    # Layer 2: Linear -> BN -> LeakyReLU.
    h = jnp.dot(h.astype(w2_ref.dtype), w2_ref[...],
                preferred_element_type=jnp.float32)
    latents = _bn_leaky_train(h, g2_ref[...], be2_ref[...], inv_n)

    # Fused value|advantage head: one MXU push, lane-dense output slab.
    out_ref[...] = (
        jnp.dot(latents.astype(wh_ref.dtype), wh_ref[...],
                preferred_element_type=jnp.float32)
        + bh_ref[...]
    )


def prepare_params(params, mxu_dtype=jnp.bfloat16):
    """One-time parameter prep (hoisted out of the per-step forward path):
    fuse the value/advantage heads, zero-pad to MXU tiles, cast MXU operands."""
    S, H = params["w1"].shape
    A = params["wa"].shape[1]
    O = 1 + A

    S_pad = _round_up(S, LANE)
    H_pad = _round_up(H, LANE)
    O_pad = _round_up(O, LANE)

    def pad2(a, rows, cols, dtype=jnp.float32):
        a = a.astype(jnp.float32)
        a = jnp.pad(a, ((0, rows - a.shape[0]), (0, cols - a.shape[1])))
        return a.astype(dtype)

    wh = jnp.concatenate([params["wv"], params["wa"]], axis=1)   # [H, 1+A]
    bh = jnp.concatenate([params["bv"], params["ba"]], axis=1)   # [1, 1+A]

    prepped = {
        # b1 / b2 dropped: training-mode BatchNorm cancels them exactly.
        "w1": pad2(params["w1"], S_pad, H_pad, mxu_dtype),
        "g1": pad2(params["g1"], 1, H_pad),
        "be1": pad2(params["be1"], 1, H_pad),
        "w2": pad2(params["w2"], H_pad, H_pad, mxu_dtype),
        "g2": pad2(params["g2"], 1, H_pad),
        "be2": pad2(params["be2"], 1, H_pad),
        "wh": pad2(wh, H_pad, O_pad, mxu_dtype),
        "bh": pad2(bh, 1, O_pad),
    }
    meta = dict(state_dim=S, hidden_dim=H, num_actions=A,
                S_pad=S_pad, H_pad=H_pad, O_pad=O_pad, mxu_dtype=mxu_dtype)
    return prepped, meta


def _vmem_ceiling_bytes():
    """Generation-aware VMEM cap: physical capacity minus headroom."""
    try:
        cap = int(pltpu.get_tpu_info().vmem_capacity_bytes)
    except Exception:
        cap = 64 << 20  # conservative fallback (v7x per-core size)
    return max(cap - (16 << 20), cap // 2)


def make_dueling_dqn_forward(params, mxu_dtype=jnp.bfloat16):
    """Returns a jitted forward(states) -> (values [B,1], advantages [B,A])."""
    prepped, meta = prepare_params(params, mxu_dtype)
    vmem_ceiling = _vmem_ceiling_bytes()

    S_pad, H_pad, O_pad = meta["S_pad"], meta["H_pad"], meta["O_pad"]
    A = meta["num_actions"]

    def _forward(states, p):
        B, S = states.shape
        assert S == meta["state_dim"]
        B_pad = _round_up(max(B, SUBLANE), SUBLANE)

        # Per-call work is just padding the states (+ tiny mask build).
        x = jnp.pad(states.astype(jnp.float32),
                    ((0, B_pad - B), (0, S_pad - S))).astype(meta["mxu_dtype"])
        # 0/1 row mask for padded batch rows; only read by the kernel when
        # B_pad > B.  Keeps layer-2 BN statistics exact with divisor B.
        mask = (jnp.arange(B_pad, dtype=jnp.int32) < B
                ).astype(jnp.float32)[:, None]

        args = (x, mask,
                p["w1"], p["g1"], p["be1"],
                p["w2"], p["g2"], p["be2"],
                p["wh"], p["bh"])

        in_out_bytes = sum(int(a.size) * a.dtype.itemsize for a in args)
        in_out_bytes += 4 * B_pad * O_pad
        act_bytes = 4 * 3 * B_pad * H_pad              # f32 intermediates
        vmem_limit = int(min(max(in_out_bytes + act_bytes + (4 << 20),
                                 16 << 20),
                             vmem_ceiling))

        flops = 2 * B_pad * (S_pad * H_pad + H_pad * H_pad + H_pad * O_pad)

        vmem = pl.BlockSpec(memory_space=pltpu.MemorySpace.VMEM)
        out = pl.pallas_call(
            functools.partial(_dueling_dqn_kernel, batch_true=B),
            out_shape=jax.ShapeDtypeStruct((B_pad, O_pad), jnp.float32),
            in_specs=[vmem] * len(args),
            out_specs=vmem,
            compiler_params=pltpu.CompilerParams(vmem_limit_bytes=vmem_limit),
            cost_estimate=pl.CostEstimate(
                flops=flops,
                transcendentals=2 * H_pad,          # two rsqrt rows
                bytes_accessed=in_out_bytes,
            ),
        )(*args)

        values = out[:B, 0:1]
        advantages = out[:B, 1:1 + A]
        return values, advantages

    fwd = jax.jit(_forward)
    return lambda states: fwd(states, prepped)


def init_params(key, state_dim, num_actions, hidden_dim):
    """Deterministic synthetic parameters (PyTorch-shaped, stored transposed
    to [in, out] so the kernel computes x @ W)."""
    ks = jax.random.split(key, 8)

    def lin(kw, kb, fan_in, fan_out):
        bound = 1.0 / jnp.sqrt(fan_in)
        w = jax.random.uniform(kw, (fan_in, fan_out), jnp.float32, -bound, bound)
        b = jax.random.uniform(kb, (1, fan_out), jnp.float32, -bound, bound)
        return w, b

    w1, b1 = lin(ks[0], ks[1], state_dim, hidden_dim)
    w2, b2 = lin(ks[2], ks[3], hidden_dim, hidden_dim)
    wv, bv = lin(ks[4], ks[5], hidden_dim, 1)
    wa, ba = lin(ks[6], ks[7], hidden_dim, num_actions)

    return {
        "w1": w1, "b1": b1,
        "g1": jnp.ones((1, hidden_dim), jnp.float32),
        "be1": jnp.zeros((1, hidden_dim), jnp.float32),
        "w2": w2, "b2": b2,
        "g2": jnp.ones((1, hidden_dim), jnp.float32),
        "be2": jnp.zeros((1, hidden_dim), jnp.float32),
        "wv": wv, "bv": bv,
        "wa": wa, "ba": ba,
    }


def reference_forward(states, p):
    """Pure-JAX reference mirroring the PyTorch forward (training-mode BN,
    including the linear biases that the kernel drops because BN cancels them)."""
    def bn(h, g, b):
        mu = jnp.mean(h, axis=0, keepdims=True)
        var = jnp.mean((h - mu) ** 2, axis=0, keepdims=True)   # biased var
        return (h - mu) * jax.lax.rsqrt(var + BN_EPS) * g + b

    def lrelu(h):
        return jnp.where(h > 0, h, NEG_SLOPE * h)

    h = states @ p["w1"] + p["b1"]
    h = lrelu(bn(h, p["g1"], p["be1"]))
    h = h @ p["w2"] + p["b2"]
    h = lrelu(bn(h, p["g2"], p["be2"]))
    return h @ p["wv"] + p["bv"], h @ p["wa"] + p["ba"]


if __name__ == "__main__":
    state_dim, num_actions, hidden_dim = 16, 4, 32

    key = jax.random.PRNGKey(0)
    k_x, k_p = jax.random.split(key)
    params = init_params(k_p, state_dim, num_actions, hidden_dim)

    states = jax.random.normal(k_x, (8, state_dim), jnp.float32)
    ref_v, ref_a = reference_forward(states, params)

    # --- exact-semantics path (f32 MXU operands), batch multiple of 8 -------
    fwd_f32 = make_dueling_dqn_forward(params, mxu_dtype=jnp.float32)
    v, a = fwd_f32(states)
    jax.block_until_ready((v, a))
    assert v.shape == (8, 1) and a.shape == (8, num_actions)
    assert jnp.allclose(v, ref_v, atol=1e-4, rtol=1e-4)
    assert jnp.allclose(a, ref_a, atol=1e-4, rtol=1e-4)

    # --- ragged batch (exercises the padded-row mask + exact BN divisor) ----
    states6 = states[:6]
    rv6, ra6 = reference_forward(states6, params)
    v6, a6 = fwd_f32(states6)
    jax.block_until_ready((v6, a6))
    assert v6.shape == (6, 1) and a6.shape == (6, num_actions)
    assert jnp.allclose(v6, rv6, atol=1e-4, rtol=1e-4)
    assert jnp.allclose(a6, ra6, atol=1e-4, rtol=1e-4)

    # --- default perf path (bf16 MXU operands, f32 accumulation / BN) -------
    # Coarse sanity bound: bf16 operand rounding is amplified through two
    # train-mode BatchNorms at batch=8, so the tolerance is relaxed.
    fwd_bf16 = make_dueling_dqn_forward(params)            # mxu_dtype=bf16
    vb, ab = fwd_bf16(states)
    jax.block_until_ready((vb, ab))
    assert vb.shape == (8, 1) and ab.shape == (8, num_actions)
    assert jnp.allclose(vb, ref_v, atol=1e-1, rtol=1e-1)
    assert jnp.allclose(ab, ref_a, atol=1e-1, rtol=1e-1)

    print("KERNEL_OK")
</pallas_src>

<mosaic_0001>
module attributes {stable_mosaic.version = 11 : i64} {
  func.func @_dueling_dqn_kernel(%arg0: memref<8x128xf32, #tpu.memory_space<vmem>>, %arg1: memref<8x1xf32, #tpu.memory_space<vmem>>, %arg2: memref<128x128xf32, #tpu.memory_space<vmem>>, %arg3: memref<1x128xf32, #tpu.memory_space<vmem>>, %arg4: memref<1x128xf32, #tpu.memory_space<vmem>>, %arg5: memref<128x128xf32, #tpu.memory_space<vmem>>, %arg6: memref<1x128xf32, #tpu.memory_space<vmem>>, %arg7: memref<1x128xf32, #tpu.memory_space<vmem>>, %arg8: memref<128x128xf32, #tpu.memory_space<vmem>>, %arg9: memref<1x128xf32, #tpu.memory_space<vmem>>, %arg10: memref<8x128xf32, #tpu.memory_space<vmem>>) attributes {dimension_semantics = [], scalar_prefetch = 0 : i64, scratch_operands = 0 : i64, tpu.core_type = #tpu.core_type<tc>} {
    %c0 = arith.constant 0 : index
    %c0_0 = arith.constant 0 : index
    %0 = vector.load %arg0[%c0, %c0_0] : memref<8x128xf32, #tpu.memory_space<vmem>>, vector<8x128xf32>
    %c0_1 = arith.constant 0 : index
    %c0_2 = arith.constant 0 : index
    %1 = vector.load %arg2[%c0_1, %c0_2] : memref<128x128xf32, #tpu.memory_space<vmem>>, vector<128x128xf32>
    %cst = arith.constant dense<0.000000e+00> : vector<8x128xf32>
    %2 = tpu.matmul %0, %1, %cst {dimension_numbers = #tpu.dot_dimension_numbers<[1], [0], [0], [1], [0, 0, 1, 1], [], []>} : vector<8x128xf32>, vector<128x128xf32>, vector<8x128xf32> -> vector<8x128xf32>
    %c0_3 = arith.constant 0 : index
    %c0_4 = arith.constant 0 : index
    %3 = vector.load %arg3[%c0_3, %c0_4] : memref<1x128xf32, #tpu.memory_space<vmem>>, vector<1x128xf32>
    %c0_5 = arith.constant 0 : index
    %c0_6 = arith.constant 0 : index
    %4 = vector.load %arg4[%c0_5, %c0_6] : memref<1x128xf32, #tpu.memory_space<vmem>>, vector<1x128xf32>
    %cst_7 = arith.constant dense<0.000000e+00> : vector<128xf32>
    %5 = vector.multi_reduction <add>, %2, %cst_7 [0] : vector<8x128xf32> to vector<128xf32>
    %6 = vector.shape_cast %5 : vector<128xf32> to vector<1x128xf32>
    %7 = arith.mulf %2, %2 : vector<8x128xf32>
    %cst_8 = arith.constant dense<0.000000e+00> : vector<128xf32>
    %8 = vector.multi_reduction <add>, %7, %cst_8 [0] : vector<8x128xf32> to vector<128xf32>
    %9 = vector.shape_cast %8 : vector<128xf32> to vector<1x128xf32>
    %cst_9 = arith.constant 1.250000e-01 : f32
    %10 = vector.broadcast %cst_9 : f32 to vector<1x128xf32>
    %11 = arith.mulf %6, %10 : vector<1x128xf32>
    %cst_10 = arith.constant 1.250000e-01 : f32
    %12 = vector.broadcast %cst_10 : f32 to vector<1x128xf32>
    %13 = arith.mulf %9, %12 : vector<1x128xf32>
    %14 = arith.mulf %11, %11 : vector<1x128xf32>
    %15 = arith.subf %13, %14 : vector<1x128xf32>
    %cst_11 = arith.constant 0.000000e+00 : f32
    %16 = vector.broadcast %cst_11 : f32 to vector<1x128xf32>
    %17 = arith.maximumf %15, %16 : vector<1x128xf32>
    %cst_12 = arith.constant 9.99999974E-6 : f32
    %18 = vector.broadcast %cst_12 : f32 to vector<1x128xf32>
    %19 = arith.addf %17, %18 : vector<1x128xf32>
    %20 = math.rsqrt %19 : vector<1x128xf32>
    %21 = arith.mulf %3, %20 : vector<1x128xf32>
    %22 = arith.mulf %11, %21 : vector<1x128xf32>
    %23 = arith.subf %4, %22 : vector<1x128xf32>
    %24 = vector.broadcast %21 : vector<1x128xf32> to vector<8x128xf32>
    %25 = arith.mulf %2, %24 : vector<8x128xf32>
    %26 = vector.broadcast %23 : vector<1x128xf32> to vector<8x128xf32>
    %27 = arith.addf %25, %26 : vector<8x128xf32>
    %cst_13 = arith.constant 0.00999999977 : f32
    %28 = vector.broadcast %cst_13 : f32 to vector<8x128xf32>
    %29 = arith.mulf %28, %27 : vector<8x128xf32>
    %30 = arith.maximumf %27, %29 : vector<8x128xf32>
    %c0_14 = arith.constant 0 : index
    %c0_15 = arith.constant 0 : index
    %31 = vector.load %arg5[%c0_14, %c0_15] : memref<128x128xf32, #tpu.memory_space<vmem>>, vector<128x128xf32>
    %cst_16 = arith.constant dense<0.000000e+00> : vector<8x128xf32>
    %32 = tpu.matmul %30, %31, %cst_16 {dimension_numbers = #tpu.dot_dimension_numbers<[1], [0], [0], [1], [0, 0, 1, 1], [], []>} : vector<8x128xf32>, vector<128x128xf32>, vector<8x128xf32> -> vector<8x128xf32>
    %c0_17 = arith.constant 0 : index
    %c0_18 = arith.constant 0 : index
    %33 = vector.load %arg6[%c0_17, %c0_18] : memref<1x128xf32, #tpu.memory_space<vmem>>, vector<1x128xf32>
    %c0_19 = arith.constant 0 : index
    %c0_20 = arith.constant 0 : index
    %34 = vector.load %arg7[%c0_19, %c0_20] : memref<1x128xf32, #tpu.memory_space<vmem>>, vector<1x128xf32>
    %cst_21 = arith.constant dense<0.000000e+00> : vector<128xf32>
    %35 = vector.multi_reduction <add>, %32, %cst_21 [0] : vector<8x128xf32> to vector<128xf32>
    %36 = vector.shape_cast %35 : vector<128xf32> to vector<1x128xf32>
    %37 = arith.mulf %32, %32 : vector<8x128xf32>
    %cst_22 = arith.constant dense<0.000000e+00> : vector<128xf32>
    %38 = vector.multi_reduction <add>, %37, %cst_22 [0] : vector<8x128xf32> to vector<128xf32>
    %39 = vector.shape_cast %38 : vector<128xf32> to vector<1x128xf32>
    %cst_23 = arith.constant 1.250000e-01 : f32
    %40 = vector.broadcast %cst_23 : f32 to vector<1x128xf32>
    %41 = arith.mulf %36, %40 : vector<1x128xf32>
    %cst_24 = arith.constant 1.250000e-01 : f32
    %42 = vector.broadcast %cst_24 : f32 to vector<1x128xf32>
    %43 = arith.mulf %39, %42 : vector<1x128xf32>
    %44 = arith.mulf %41, %41 : vector<1x128xf32>
    %45 = arith.subf %43, %44 : vector<1x128xf32>
    %cst_25 = arith.constant 0.000000e+00 : f32
    %46 = vector.broadcast %cst_25 : f32 to vector<1x128xf32>
    %47 = arith.maximumf %45, %46 : vector<1x128xf32>
    %cst_26 = arith.constant 9.99999974E-6 : f32
    %48 = vector.broadcast %cst_26 : f32 to vector<1x128xf32>
    %49 = arith.addf %47, %48 : vector<1x128xf32>
    %50 = math.rsqrt %49 : vector<1x128xf32>
    %51 = arith.mulf %33, %50 : vector<1x128xf32>
    %52 = arith.mulf %41, %51 : vector<1x128xf32>
    %53 = arith.subf %34, %52 : vector<1x128xf32>
    %54 = vector.broadcast %51 : vector<1x128xf32> to vector<8x128xf32>
    %55 = arith.mulf %32, %54 : vector<8x128xf32>
    %56 = vector.broadcast %53 : vector<1x128xf32> to vector<8x128xf32>
    %57 = arith.addf %55, %56 : vector<8x128xf32>
    %cst_27 = arith.constant 0.00999999977 : f32
    %58 = vector.broadcast %cst_27 : f32 to vector<8x128xf32>
    %59 = arith.mulf %58, %57 : vector<8x128xf32>
    %60 = arith.maximumf %57, %59 : vector<8x128xf32>
    %c0_28 = arith.constant 0 : index
    %c0_29 = arith.constant 0 : index
    %61 = vector.load %arg8[%c0_28, %c0_29] : memref<128x128xf32, #tpu.memory_space<vmem>>, vector<128x128xf32>
    %cst_30 = arith.constant dense<0.000000e+00> : vector<8x128xf32>
    %62 = tpu.matmul %60, %61, %cst_30 {dimension_numbers = #tpu.dot_dimension_numbers<[1], [0], [0], [1], [0, 0, 1, 1], [], []>} : vector<8x128xf32>, vector<128x128xf32>, vector<8x128xf32> -> vector<8x128xf32>
    %c0_31 = arith.constant 0 : index
    %c0_32 = arith.constant 0 : index
    %63 = vector.load %arg9[%c0_31, %c0_32] : memref<1x128xf32, #tpu.memory_space<vmem>>, vector<1x128xf32>
    %64 = vector.broadcast %63 : vector<1x128xf32> to vector<8x128xf32>
    %65 = arith.addf %62, %64 : vector<8x128xf32>
    %c0_33 = arith.constant 0 : index
    %c0_34 = arith.constant 0 : index
    %66 = vector.load %arg10[%c0_33, %c0_34] : memref<8x128xf32, #tpu.memory_space<vmem>>, vector<8x128xf32>
    tpu.vector_store %arg10[%c0_33, %c0_34], %65 {strides = array<i32>} : memref<8x128xf32, #tpu.memory_space<vmem>>, vector<8x128xf32>,
    return
  }
}

</mosaic_0001>

<bundles_post_ra>
// kernel: _forward.1
= control target key start
LH: loop header
LB: loop body
LE: loop exit
PB: predicated region body
PF: predicated region fallthrough
CT: control target
= control target key end

     0   :  { %15 = vsyncpa [#allocation3], 0  ;;  %s911_s0 = inlined_call_operand.vmem [shape: f32[8,128], index: 0, kind: input, shape index: {}]   ;;  %s912_s1 = inlined_call_operand.vmem [shape: f32[8,1], index: 1, kind: input, shape index: {}]   ;;  %s913_s2 = inlined_call_operand.hbm [shape: f32[128,128], index: 2, kind: input, shape index: {}]   ;;  %s914_s3 = inlined_call_operand.vmem [shape: f32[1,128], index: 3, kind: input, shape index: {}]   ;;  %s915_s4 = inlined_call_operand.vmem [shape: f32[1,128], index: 4, kind: input, shape index: {}]   ;;  %s916_s5 = inlined_call_operand.hbm [shape: f32[128,128], index: 5, kind: input, shape index: {}]   ;;  %s917_s6 = inlined_call_operand.vmem [shape: f32[1,128], index: 6, kind: input, shape index: {}]   ;;  %s918_s7 = inlined_call_operand.vmem [shape: f32[1,128], index: 7, kind: input, shape index: {}]   ;;  %s919_s8 = inlined_call_operand.hbm [shape: f32[128,128], index: 8, kind: input, shape index: {}]   ;;  %s920_s9 = inlined_call_operand.vmem [shape: f32[1,128], index: 9, kind: input, shape index: {}]   ;;  %s921_s10 = inlined_call_operand.vmem [shape: f32[8,128], index: 10, kind: output, shape index: {}]  }
   0x1   :  { %16 = vsyncpa [#allocation5], 0  ;;  %s742_s12 = smov [#allocation4]   ;;  %s743_s14 = smov [#allocation2]  }
   0x2   :  { %s42_s13 = sshll.u32 %s742_s12, 4  ;;  %s26_s15 = sshll.u32 %s743_s14, 4  ;;  %s43_s13 = int_to_ptr.vmem [resolvable:$true] %s42_s13  ;;  %s805_s15 = int_to_ptr.vmem [resolvable:$true] %s26_s15 }
   0x3   :  { %s672_s18 = scalar_lea.hbm %s916_s5, 2048 }
   0x4   :  { %p673_p0 = scmp.ne.s32.totalorder %s916_s5, %s672_s18  ;;  %p676_p1 = scmp.lt.u32.totalorder %s672_s18, %s916_s5 }
   0x6   :  { %p678_p2 = pnand %p676_p1, %p673_p0 }
   0x8   :  { %681 = shalt.err (!%p678_p2)
}
   0x9   :  { %s682_s23 = scalar_lea.vmem %s43_s13, 2048  ;;  %p687_p4 = scmp.lt.s32.totalorder %s43_s13, %s43_s13 }
   0xa   :  { %p683_p3 = scmp.ne.s32.totalorder %s43_s13, %s682_s23  ;;  %p688_p5 = scmp.lt.s32.totalorder %s682_s23, %s682_s23 }
   0xc   :  { %p689_p6 = por %p688_p5, %p687_p4 }
   0xe   :  { %p690_p7 = pnand %p689_p6, %p683_p3 }
  0x10   :  { %693 = shalt.err (!%p690_p7)
}
  0x11   :  { %s744_s24 = smov 128   ;;  %s745_s25 = smov 8  }
  0x12   :  { %48 = dma.hbm_to_vmem [thread:$0]  %s916_s5, 2048, %s43_s13, [#allocation5], %s744_s24, %s744_s24, %s745_s25  }
  0x13   :  { %s694_s29 = scalar_lea.hbm %s913_s2, 2048 }
  0x14   :  { %p695_p8 = scmp.ne.s32.totalorder %s913_s2, %s694_s29  ;;  %p698_p9 = scmp.lt.u32.totalorder %s694_s29, %s913_s2 }
  0x16   :  { %p700_p10 = pnand %p698_p9, %p695_p8 }
  0x18   :  { %703 = shalt.err (!%p700_p10)
}
  0x19   :  { %s704_s16 = scalar_lea.vmem %s805_s15, 2048  ;;  %p709_p12 = scmp.lt.s32.totalorder %s805_s15, %s805_s15 }
  0x1a   :  { %p705_p11 = scmp.ne.s32.totalorder %s805_s15, %s704_s16  ;;  %p710_p13 = scmp.lt.s32.totalorder %s704_s16, %s704_s16 }
  0x1c   :  { %p711_p0 = por %p710_p13, %p709_p12 }
  0x1e   :  { %p712_p1 = pnand %p711_p0, %p705_p11 }
  0x20   :  { %715 = shalt.err (!%p712_p1)
}
  0x21   :  { %32 = dma.hbm_to_vmem [thread:$0]  %s913_s2, 2048, %s805_s15, [#allocation3], %s744_s24, %s744_s24, %s745_s25  }
  0x22   :  { %s746_s17 = smov [#allocation6]   ;;  %s716_s21 = scalar_lea.hbm %s919_s8, 2048 }
  0x23   :  { %s58_s18 = sshll.u32 %s746_s17, 4  ;;  %p717_p2 = scmp.ne.s32.totalorder %s919_s8, %s716_s21  ;;  %s59_s18 = int_to_ptr.vmem [resolvable:$true] %s58_s18 }
  0x24   :  { %p720_p3 = scmp.lt.u32.totalorder %s716_s21, %s919_s8 }
  0x26   :  { %p722_p4 = pnand %p720_p3, %p717_p2 }
  0x28   :  { %725 = shalt.err (!%p722_p4)
}
  0x29   :  { %s726_s1 = scalar_lea.vmem %s59_s18, 2048  ;;  %p731_p6 = scmp.lt.s32.totalorder %s59_s18, %s59_s18 }
  0x2a   :  { %p727_p5 = scmp.ne.s32.totalorder %s59_s18, %s726_s1  ;;  %p732_p7 = scmp.lt.s32.totalorder %s726_s1, %s726_s1 }
  0x2c   :  { %p733_p8 = por %p732_p7, %p731_p6 }
  0x2e   :  { %p734_p9 = pnand %p733_p8, %p727_p5 }
  0x30   :  { %737 = shalt.err (!%p734_p9)
}
  0x31   :  { %64 = dma.hbm_to_vmem [thread:$0]  %s919_s8, 2048, %s59_s18, [#allocation5], %s744_s24, %s744_s24, %s745_s25  }
  0x32   :  { %738 = dma.done.wait [#allocation3], 2048  }
  0x33   :  { %739 = vsyncadd [#allocation3], 4294965248 }
  0x34   :  { %740 = dma.done.wait [#allocation5], 4096  }
  0x35   :  { %741 = vsyncadd [#allocation5], 4294963200  ;;  %v747_v0 = vmov 0.0|0.0   ;;  %vm748_vm0 = vmmov 0   ;;  %v749_v1 = vmov 0.0   ;;  %v77_v2 = vld [vmem:[#allocation2] sm:$0xff] }
  0x36   :  { %588 = vmatprep.subr.bf16.mxu0 %v747_v0  ;;  %515 = vmatprep.mubr.msk.f32.mxu0 %vm748_vm0, %v749_v1  ;;  %v78_v3 = vld [vmem:[#allocation2 + $0x8] sm:$0xff]  ;;  %v79_v4 = vld [vmem:[#allocation2 + $0x10] sm:$0xff]  ;;  %v80_v6 = vld [vmem:[#allocation2 + $0x18] sm:$0xff] }
  0x37   :  { %612 = vmatprep.subr.bf16.mxu1 %v747_v0  ;;  %550 = vmatprep.mubr.msk.f32.mxu1 %vm748_vm0, %v749_v1  ;;  %v589_v5 = vpack.c.bf16 %v78_v3, %v77_v2  ;;  %v592_v7 = vpack.c.bf16 %v80_v6, %v79_v4  ;;  %v81_v8 = vld [vmem:[#allocation2 + $0x20] sm:$0xff]  ;;  %v82_v9 = vld [vmem:[#allocation2 + $0x28] sm:$0xff]  ;;  %v83_v11 = vld [vmem:[#allocation2 + $0x30] sm:$0xff] }
  0x38   :  { %v595_v10 = vpack.c.bf16 %v82_v9, %v81_v8  ;;  %v84_v12 = vld [vmem:[#allocation2 + $0x38] sm:$0xff]  ;;  %v85_v14 = vld [vmem:[#allocation2 + $0x40] sm:$0xff]  ;;  %v86_v15 = vld [vmem:[#allocation2 + $0x48] sm:$0xff]  ;;  %v189_v9 = vlaneseq }
  0x39   :  { %590 = vmatpush3.bf16.msra.mxu0 %v589_v5  ;;  %v598_v13 = vpack.c.bf16 %v84_v12, %v83_v11  ;;  %v601_v16 = vpack.c.bf16 %v86_v15, %v85_v14  ;;  %v87_v17 = vld [vmem:[#allocation2 + $0x50] sm:$0xff]  ;;  %v88_v18 = vld [vmem:[#allocation2 + $0x58] sm:$0xff]  ;;  %v89_v20 = vld [vmem:[#allocation2 + $0x60] sm:$0xff] }
  0x3a   :  { %591 = vmatprep.subr.bf16.mxu0 %v747_v0  ;;  %v604_v19 = vpack.c.bf16 %v88_v18, %v87_v17  ;;  %v90_v21 = vld [vmem:[#allocation2 + $0x68] sm:$0xff]  ;;  %v91_v23 = vld [vmem:[#allocation2 + $0x70] sm:$0xff]  ;;  %v92_v24 = vld [vmem:[#allocation2 + $0x78] sm:$0xff] }
  0x3b   :  { %v607_v22 = vpack.c.bf16 %v90_v21, %v89_v20  ;;  %v610_v25 = vpack.c.bf16 %v92_v24, %v91_v23  ;;  %v76_v26 = vld [vmem:[%s911_s0] sm:$0xff]  ;;  %v204_v27 = vld [vmem:[#allocation4] sm:$0xff]  ;;  %v205_v28 = vld [vmem:[#allocation4 + $0x8] sm:$0xff] }
  0x3c   :  { %v613_v29 = vpack.c.bf16 %v205_v28, %v204_v27  ;;  %v206_v30 = vld [vmem:[#allocation4 + $0x10] sm:$0xff]  ;;  %v207_v31 = vld [vmem:[#allocation4 + $0x18] sm:$0xff]  ;;  %v208_v33 = vld [vmem:[#allocation4 + $0x20] sm:$0xff] }
  0x3d   :  { %593 = vmatpush3.bf16.msra.mxu0 %v592_v7  ;;  %v616_v32 = vpack.c.bf16 %v207_v31, %v206_v30  ;;  %v209_v34 = vld [vmem:[#allocation4 + $0x28] sm:$0xff]  ;;  %v210_v36 = vld [vmem:[#allocation4 + $0x30] sm:$0xff]  ;;  %v211_v37 = vld [vmem:[#allocation4 + $0x38] sm:$0xff] }
  0x3e   :  { %594 = vmatprep.subr.bf16.mxu0 %v747_v0  ;;  %614 = vmatpush3.bf16.msra.mxu1 %v613_v29  ;;  %v619_v35 = vpack.c.bf16 %v209_v34, %v208_v33  ;;  %v622_v38 = vpack.c.bf16 %v211_v37, %v210_v36  ;;  %v212_v39 = vld [vmem:[#allocation4 + $0x40] sm:$0xff]  ;;  %v213_v40 = vld [vmem:[#allocation4 + $0x48] sm:$0xff]  ;;  %v214_v42 = vld [vmem:[#allocation4 + $0x50] sm:$0xff] }
  0x3f   :  { %615 = vmatprep.subr.bf16.mxu1 %v747_v0  ;;  %v625_v41 = vpack.c.bf16 %v213_v40, %v212_v39  ;;  %v215_v43 = vld [vmem:[#allocation4 + $0x58] sm:$0xff]  ;;  %v216_v45 = vld [vmem:[#allocation4 + $0x60] sm:$0xff]  ;;  %v217_v46 = vld [vmem:[#allocation4 + $0x68] sm:$0xff] }
  0x40   :  { %v628_v44 = vpack.c.bf16 %v215_v43, %v214_v42  ;;  %v218_v47 = vld [vmem:[#allocation4 + $0x70] sm:$0xff]  ;;  %v631_v48 = vpack.c.bf16 %v217_v46, %v216_v45  ;;  %v219_v49 = vld [vmem:[#allocation4 + $0x78] sm:$0xff]  ;;  %v331_v24 = vld [vmem:[#allocation6] sm:$0xff] }
  0x41   :  { %596 = vmatpush3.bf16.msra.mxu0 %v595_v10  ;;  %v634_v50 = vpack.c.bf16 %v219_v49, %v218_v47  ;;  %v190_v10 = vshrl.u32 %v189_v9, 7  ;;  %v163_v11 = vld [vmem:[%s914_s3] sm:$0x1]  ;;  %v333_v27 = vld [vmem:[#allocation6 + $0x10] sm:$0xff]  ;;  %v335_v30 = vld [vmem:[#allocation6 + $0x20] sm:$0xff] }
  0x42   :  { %597 = vmatprep.subr.bf16.mxu0 %v747_v0  ;;  %617 = vmatpush3.bf16.msra.mxu1 %v616_v32  ;;  %v164_v15 = vld [vmem:[%s915_s4] sm:$0x1]  ;;  %v336_v31 = vld [vmem:[#allocation6 + $0x28] sm:$0xff]  ;;  %v337_v33 = vld [vmem:[#allocation6 + $0x30] sm:$0xff] }
  0x43   :  { %618 = vmatprep.subr.bf16.mxu1 %v747_v0  ;;  %v883_v12 = vsub.s32 0, %v190_v10  ;;  %v334_v28 = vld [vmem:[#allocation6 + $0x18] sm:$0xff]  ;;  %v643_v32 = vpack.c.bf16 %v336_v31, %v335_v30  ;;  %v339_v36 = vld [vmem:[#allocation6 + $0x40] sm:$0xff]  ;;  %v340_v37 = vld [vmem:[#allocation6 + $0x48] sm:$0xff] }
  0x44   :  { %v640_v29 = vpack.c.bf16 %v334_v28, %v333_v27  ;;  %v338_v34 = vld [vmem:[#allocation6 + $0x38] sm:$0xff]  ;;  %v341_v39 = vld [vmem:[#allocation6 + $0x50] sm:$0xff]  ;;  %v343_v42 = vld [vmem:[#allocation6 + $0x60] sm:$0xff] }
  0x45   :  { %599 = vmatpush3.bf16.msra.mxu0 %v598_v13  ;;  %v342_v40 = vld [vmem:[#allocation6 + $0x58] sm:$0xff]  ;;  %v344_v43 = vld [vmem:[#allocation6 + $0x68] sm:$0xff]  ;;  %v345_v45 = vld [vmem:[#allocation6 + $0x70] sm:$0xff] }
  0x46   :  { %600 = vmatprep.subr.bf16.mxu0 %v747_v0  ;;  %620 = vmatpush3.bf16.msra.mxu1 %v619_v35  ;;  %v646_v35 = vpack.c.bf16 %v338_v34, %v337_v33  ;;  %v346_v46 = vld [vmem:[#allocation6 + $0x78] sm:$0xff] }
  0x47   :  { %621 = vmatprep.subr.bf16.mxu1 %v747_v0  ;;  %v658_v47 = vpack.c.bf16 %v346_v46, %v345_v45 }
  0x49   :  { %602 = vmatpush3.bf16.msra.mxu0 %v601_v16 }
  0x4a   :  { %603 = vmatprep.subr.bf16.mxu0 %v747_v0  ;;  %623 = vmatpush3.bf16.msra.mxu1 %v622_v38  ;;  %v649_v38 = vpack.c.bf16 %v340_v37, %v339_v36 }
  0x4b   :  { %624 = vmatprep.subr.bf16.mxu1 %v747_v0 }
  0x4d   :  { %605 = vmatpush3.bf16.msra.mxu0 %v604_v19 }
  0x4e   :  { %606 = vmatprep.subr.bf16.mxu0 %v747_v0  ;;  %626 = vmatpush3.bf16.msra.mxu1 %v625_v41  ;;  %v652_v41 = vpack.c.bf16 %v342_v40, %v341_v39 }
  0x4f   :  { %627 = vmatprep.subr.bf16.mxu1 %v747_v0 }
  0x51   :  { %608 = vmatpush3.bf16.msra.mxu0 %v607_v22 }
  0x52   :  { %609 = vmatprep.subr.bf16.mxu0 %v747_v0  ;;  %629 = vmatpush3.bf16.msra.mxu1 %v628_v44  ;;  %v655_v44 = vpack.c.bf16 %v344_v43, %v343_v42 }
  0x53   :  { %630 = vmatprep.subr.bf16.mxu1 %v747_v0 }
  0x55   :  { %611 = vmatpush3.bf16.msra.mxu0 %v610_v25  ;;  %v332_v25 = vld [vmem:[#allocation6 + $0x8] sm:$0xff] }
  0x56   :  { %636 = vmatprep.subr.bf16.mxu0 %v747_v0  ;;  %632 = vmatpush3.bf16.msra.mxu1 %v631_v48 }
  0x57   :  { %633 = vmatprep.subr.bf16.mxu1 %v747_v0 }
  0x58   :  { %516 = vmatmul.mubr.f32.vlgmr.msra.gmra.mrb[0].mxu0 %v76_v26  ;;  %v637_v26 = vpack.c.bf16 %v332_v25, %v331_v24 }
  0x59   :  { %585 = vmatprep.mubr.msk.f32.mxu0 %vm748_vm0, %v749_v1 }
  0x5a   :  { %635 = vmatpush3.bf16.msra.mxu1 %v634_v50  ;;  %638 = vmatpush3.bf16.msra.mxu0 %v637_v26 }
  0x5b   :  { %639 = vmatprep.subr.bf16.mxu0 %v747_v0 }
  0x5e   :  { %641 = vmatpush3.bf16.msra.mxu0 %v640_v29 }
  0x5f   :  { %642 = vmatprep.subr.bf16.mxu0 %v747_v0 }
  0x62   :  { %644 = vmatpush3.bf16.msra.mxu0 %v643_v32 }
  0x63   :  { %645 = vmatprep.subr.bf16.mxu0 %v747_v0 }
  0x66   :  { %647 = vmatpush3.bf16.msra.mxu0 %v646_v35 }
  0x67   :  { %648 = vmatprep.subr.bf16.mxu0 %v747_v0 }
  0x6a   :  { %650 = vmatpush3.bf16.msra.mxu0 %v649_v38 }
  0x6b   :  { %651 = vmatprep.subr.bf16.mxu0 %v747_v0 }
  0x6e   :  { %653 = vmatpush3.bf16.msra.mxu0 %v652_v41 }
  0x6f   :  { %654 = vmatprep.subr.bf16.mxu0 %v747_v0 }
  0x72   :  { %656 = vmatpush3.bf16.msra.mxu0 %v655_v44 }
  0x73   :  { %657 = vmatprep.subr.bf16.mxu0 %v747_v0 }
  0x76   :  { %659 = vmatpush3.bf16.msra.mxu0 %v658_v47 }
 0x12b   :  { %v159_v51 = vpop.f32.mrb[0].mxu0 }
 0x12c   :  { %v165_v52 = vrot.slane %v159_v51, 4  ;;  %v171_v53 = vmul.f32 %v159_v51, %v159_v51  ;;  %v517_v54 = vpop.f32.mrb[1].mxu0 }
 0x12e   :  { %v166_v55 = vadd.f32 %v165_v52, %v159_v51  ;;  %v172_v56 = vrot.slane %v171_v53, 4 }
 0x130   :  { %v167_v57 = vrot.slane %v166_v55, 2  ;;  %v173_v58 = vadd.f32 %v172_v56, %v171_v53 }
 0x132   :  { %v168_v59 = vadd.f32 %v167_v57, %v166_v55  ;;  %v174_v60 = vrot.slane %v173_v58, 2 }
 0x134   :  { %v169_v61 = vrot.slane %v168_v59, 1  ;;  %v175_v62 = vadd.f32 %v174_v60, %v173_v58 }
 0x136   :  { %v170_v63 = vadd.f32 %v169_v61, %v168_v59  ;;  %v176_v1 = vrot.slane %v175_v62, 1 }
 0x138   :  { %v177_v2 = vadd.f32 %v176_v1, %v175_v62  ;;  %v178_v3 = vmul.f32 0.125, %v170_v63 }
 0x13a   :  { %v179_v4 = vmul.f32 0.125, %v177_v2  ;;  %v180_v5 = vmul.f32 %v178_v3, %v178_v3 }
 0x13c   :  { %v181_v6 = vsub.f32 %v179_v4, %v180_v5  ;;  %v290_v5 = vld [vmem:[%s917_s6] sm:$0x1] }
 0x13e   :  { %v182_v7 = vmax.f32 %v181_v6, 0.0 }
 0x140   :  { %v183_v8 = vadd.f32 1e-05, %v182_v7 }
 0x142   :  { %668 = vrsqrt.f32 %v183_v8  ;;  %v291_v8 = vld [vmem:[%s918_s7] sm:$0x1] }
 0x14c   :  { %v669_v13 = vpop.eup %668 }
 0x14d   :  { %v185_v14 = vmul.f32 %v669_v13, %v163_v11 }
 0x14f   :  { %v186_v16 = vmul.f32 %v185_v14, %v178_v3  ;;  %v192_v17 = vrot.slane %v185_v14, %v883_v12 }
 0x151   :  { %v187_v18 = vsub.f32 %v164_v15, %v186_v16  ;;  %v194_v19 = vmul.f32 %v192_v17, %v159_v51 }
 0x153   :  { %v199_v20 = vrot.slane %v187_v18, %v883_v12  ;;  %v431_v18 = vld [vmem:[%s920_s9] ss:$0 sm:$0xff] }
 0x155   :  { %v201_v21 = vadd.f32 %v199_v20, %v194_v19 }
 0x157   :  { %v202_v22 = vmul.f32 0.01, %v201_v21 }
 0x159   :  { %v203_v23 = vmax.f32 %v201_v21, %v202_v22 }
 0x15b   :  { %551 = vmatmul.mubr.f32.vlgmr.msra.gmra.mrb[0].mxu1 %v203_v23 }
 0x22e   :  { %v286_v48 = vpop.f32.mrb[0].mxu1 }
 0x22f   :  { %v292_v49 = vrot.slane %v286_v48, 4  ;;  %v298_v50 = vmul.f32 %v286_v48, %v286_v48  ;;  %v552_v51 = vpop.f32.mrb[1].mxu1 }
 0x231   :  { %v293_v52 = vadd.f32 %v292_v49, %v286_v48  ;;  %v299_v53 = vrot.slane %v298_v50, 4 }
 0x233   :  { %v294_v54 = vrot.slane %v293_v52, 2  ;;  %v300_v55 = vadd.f32 %v299_v53, %v298_v50 }
 0x235   :  { %v295_v56 = vadd.f32 %v294_v54, %v293_v52  ;;  %v301_v57 = vrot.slane %v300_v55, 2 }
 0x237   :  { %v296_v58 = vrot.slane %v295_v56, 1  ;;  %v302_v59 = vadd.f32 %v301_v57, %v300_v55 }
 0x239   :  { %v297_v60 = vadd.f32 %v296_v58, %v295_v56  ;;  %v303_v61 = vrot.slane %v302_v59, 1 }
 0x23b   :  { %v304_v62 = vadd.f32 %v303_v61, %v302_v59  ;;  %v305_v0 = vmul.f32 0.125, %v297_v60 }
 0x23d   :  { %v306_v63 = vmul.f32 0.125, %v304_v62  ;;  %v307_v1 = vmul.f32 %v305_v0, %v305_v0 }
 0x23f   :  { %v308_v2 = vsub.f32 %v306_v63, %v307_v1 }
 0x241   :  { %v309_v3 = vmax.f32 %v308_v2, 0.0 }
 0x243   :  { %v310_v4 = vadd.f32 1e-05, %v309_v3 }
 0x245   :  { %670 = vrsqrt.f32 %v310_v4 }
 0x24f   :  { %v671_v6 = vpop.eup %670 }
 0x250   :  { %v312_v7 = vmul.f32 %v671_v6, %v290_v5 }
 0x252   :  { %v313_v9 = vmul.f32 %v312_v7, %v305_v0  ;;  %v319_v10 = vrot.slane %v312_v7, %v883_v12 }
 0x254   :  { %v314_v11 = vsub.f32 %v291_v8, %v313_v9  ;;  %v321_v13 = vmul.f32 %v319_v10, %v286_v48 }
 0x256   :  { %v326_v14 = vrot.slane %v314_v11, %v883_v12 }
 0x258   :  { %v328_v15 = vadd.f32 %v326_v14, %v321_v13 }
 0x25a   :  { %v329_v16 = vmul.f32 0.01, %v328_v15 }
 0x25c   :  { %v330_v17 = vmax.f32 %v328_v15, %v329_v16 }
 0x25e   :  { %586 = vmatmul.mubr.f32.vlgmr.msra.gmra.mrb[2].mxu0 %v330_v17 }
 0x331   :  { %v420_v19 = vpop.f32.mrb[2].mxu0 }
 0x332   :  { %v421_v20 = vadd.f32 %v431_v18, %v420_v19  ;;  %v587_v21 = vpop.f32.mrb[3].mxu0 }
 0x334   :  { %424 = vst [vmem:[%s921_s10] sm:$0xff] %v421_v20 }
 0x335   :  { %429 = vsyncpa [#allocation3], 1 }
 0x336   :  { %430 = vsyncpa [#allocation5], 1 }

</bundles_post_ra>
